<compile_context>
chip_gen: v6e
topology: v6e:2x2x1
jax: 0.10.0
libtpu: 0.0.40
codegen_flags: <defaults>
</compile_context>

<pallas_src>
import jax
import jax.numpy as jnp
from jax.experimental import pallas as pl
from jax.experimental.pallas import tpu as pltpu


# --------------------------------------------------------------------------- #
# Kernel
# --------------------------------------------------------------------------- #
def _ris_mul_kernel(c_ref, x_ref, o_ref):
    """Per-row-tile complex multiply: (c_re + i c_im) * (x_re + i x_im).

    c_ref: (1, n)  normalized phase, resident across the whole grid.
    x_ref: (tm, n) row tile of the input signal.
    o_ref: (tm, n) row tile of the output.
    """
    h = x_ref.shape[1] // 2
    # Ref slices (not value slices): aligned vld straight from VMEM.
    c_re = c_ref[:, :h]          # (1, h)
    c_im = c_ref[:, h:]
    x_re = x_ref[:, :h]          # (tm, h)
    x_im = x_ref[:, h:]
    o_ref[:, :h] = c_re * x_re - c_im * x_im
    o_ref[:, h:] = c_re * x_im + c_im * x_re


# --------------------------------------------------------------------------- #
# Tiling / wrapper
# --------------------------------------------------------------------------- #
def _tpu_vmem_bytes():
    try:
        return int(pltpu.get_tpu_info().vmem_capacity_bytes)
    except Exception:
        # Conservative fallback (v7x-class per-core VMEM).
        return 64 * 1024 * 1024


def _pick_row_tile(m, n, itemsize):
    """Byte-targeted row-tile size + VMEM limit, per TPU generation."""
    vmem = _tpu_vmem_bytes()
    if vmem <= 64 * 1024 * 1024:
        # v7x-class: 64 MiB VMEM, ~3.2 TB/s HBM.  Bigger-in-bytes tiles are
        # needed to amortize per-step overhead, but keep the double-buffered
        # footprint well under the cap (leave >= 16 MiB for compiler scratch
        # and the resident phase block).
        tile_bytes = 6 * 1024 * 1024
        budget_bytes = 44 * 1024 * 1024
        vmem_limit = 48 * 1024 * 1024
    else:
        # v5e / v6e-class: 128 MiB VMEM - use it.
        tile_bytes = 8 * 1024 * 1024
        budget_bytes = 88 * 1024 * 1024
        vmem_limit = 96 * 1024 * 1024

    row_bytes = max(1, n * itemsize)

    if m < 8:
        # Block == full array dims (tiny-m edge case, no (8,128) padding games).
        return m, vmem_limit

    tm = tile_bytes // row_bytes                     # per-tile byte target
    tm = min(tm, budget_bytes // (4 * row_bytes))    # 2 bufs x (in + out) <= budget
    if m >= 16:
        tm = min(tm, m // 2)                         # >= 2 grid steps (both TCs busy)
    tm = max(8, min(m, (tm // 8) * 8))

    # Prefer an even number of grid steps (balanced split across 2 TensorCores).
    ntiles = -(-m // tm)
    if ntiles > 1 and ntiles % 2 == 1:
        ntiles += 1
        tm = max(8, ((-(-m // ntiles) + 7) // 8) * 8)
    return tm, vmem_limit


def _normalize_phase(phase, n, out_dtype):
    """One-time normalization of the (1, n) phase vector, in float32.

    c = p / max_j sqrt(p_re[j]^2 + p_im[j]^2)   (max column L2 norm)
    NOTE: an all-zero phase gives p_max = 0 and divides by zero, matching the
    PyTorch module's behaviour (inf/nan propagate).
    """
    h = n // 2
    p = phase.reshape(2, h).astype(jnp.float32)
    p_max = jnp.sqrt(jnp.max(p[0] * p[0] + p[1] * p[1]))
    return (p / p_max).reshape(1, n).astype(out_dtype)


def ris_forward(x, phase, tm=None):
    m, n = x.shape
    assert n % 2 == 0, "n must be even (real/imag split)"

    # One-time phase normalization: plain jnp (tiny (1, n) op, no extra launch).
    c = _normalize_phase(phase, n, x.dtype)

    if tm is None:
        tm, vmem_limit = _pick_row_tile(m, n, x.dtype.itemsize)
    else:
        _, vmem_limit = _pick_row_tile(m, n, x.dtype.itemsize)
        tm = max(1, min(tm, m))

    grid = (pl.cdiv(m, tm),)
    itemsize = x.dtype.itemsize

    return pl.pallas_call(
        _ris_mul_kernel,
        out_shape=jax.ShapeDtypeStruct((m, n), x.dtype),
        grid=grid,
        in_specs=[
            # Normalized phase: pinned to block (0, 0) -> loaded once, resident.
            pl.BlockSpec((1, n), lambda i: (0, 0)),
            # x: one row tile per grid step (auto double-buffered DMA pipeline).
            # (Default depth-2 buffering; bump via pipeline_mode=pl.Buffered(3)
            #  only if a trace shows exposed input DMA at this tile size.)
            pl.BlockSpec((tm, n), lambda i: (i, 0)),
        ],
        out_specs=pl.BlockSpec((tm, n), lambda i: (i, 0)),
        compiler_params=pltpu.CompilerParams(
            dimension_semantics=("parallel",),   # shard row tiles across TCs (v7x)
            vmem_limit_bytes=vmem_limit,
        ),
        cost_estimate=pl.CostEstimate(
            flops=3 * m * n,
            transcendentals=0,
            bytes_accessed=(2 * m * n + n) * itemsize,
        ),
    )(c, x)


# --------------------------------------------------------------------------- #
# Pure-JAX reference (mirrors the PyTorch forward exactly)
# --------------------------------------------------------------------------- #
def ris_reference(x, phase):
    m, n = x.shape
    h = n // 2
    p1 = phase.reshape(2, h).astype(jnp.float32)
    norm = jnp.linalg.norm(p1, 2, axis=0)
    p_max = jnp.max(norm)
    p2 = (p1 / p_max).reshape(1, n).astype(x.dtype)
    x3 = jnp.broadcast_to(p2, (m, n))
    out_re = x3[:, :h] * x[:, :h] - x3[:, h:] * x[:, h:]
    out_im = x3[:, :h] * x[:, h:] + x3[:, h:] * x[:, :h]
    return jnp.concatenate([out_re, out_im], axis=1)


if __name__ == "__main__":
    # Small but grid-exercising shapes: m=512 rows, n=256 (h=128, lane-aligned).
    m, n = 512, 256

    key = jax.random.PRNGKey(0)
    kx, kp = jax.random.split(key)
    x = jax.random.normal(kx, (m, n), dtype=jnp.float32)
    # nn.Embedding(1, n) default init ~ N(0, 1); deterministic synthetic weights.
    phase = jax.random.normal(kp, (1, n), dtype=jnp.float32)

    # Auto (byte-targeted) tiling -> 2 even grid steps for this shape.
    out = ris_forward(x, phase)
    out = jax.block_until_ready(out)

    ref = ris_reference(x, phase)
    assert out.shape == (m, n)
    assert jnp.allclose(out, ref, atol=1e-5, rtol=1e-5)

    print("KERNEL_OK")
</pallas_src>

<mosaic_0001>
module attributes {stable_mosaic.version = 11 : i64} {
  func.func @_ris_mul_kernel(%arg0: i32, %arg1: memref<1x256xf32, #tpu.memory_space<vmem>>, %arg2: memref<256x256xf32, #tpu.memory_space<vmem>>, %arg3: memref<256x256xf32, #tpu.memory_space<vmem>>) attributes {dimension_semantics = [#tpu.dimension_semantics<parallel>], iteration_bounds = array<i64: 2>, scalar_prefetch = 0 : i64, scratch_operands = 0 : i64, tpu.core_type = #tpu.core_type<tc>, window_params = [{pipeline_mode = #tpu.pipeline_mode<synchronous>, transform_indices = @transform_0, window_bounds = array<i64: 1, 256>}, {transform_indices = @transform_1, window_bounds = array<i64: 256, 256>}, {transform_indices = @transform_2, window_bounds = array<i64: 256, 256>}]} {
    %c0 = arith.constant 0 : index
    %c0_0 = arith.constant 0 : index
    %0 = vector.load %arg1[%c0, %c0_0] : memref<1x256xf32, #tpu.memory_space<vmem>>, vector<1x128xf32>
    %c0_1 = arith.constant 0 : index
    %c128 = arith.constant 128 : index
    %1 = vector.load %arg1[%c0_1, %c128] : memref<1x256xf32, #tpu.memory_space<vmem>>, vector<1x128xf32>
    %c0_2 = arith.constant 0 : index
    %c0_3 = arith.constant 0 : index
    %2 = vector.load %arg2[%c0_2, %c0_3] : memref<256x256xf32, #tpu.memory_space<vmem>>, vector<256x128xf32>
    %c0_4 = arith.constant 0 : index
    %c128_5 = arith.constant 128 : index
    %3 = vector.load %arg2[%c0_4, %c128_5] : memref<256x256xf32, #tpu.memory_space<vmem>>, vector<256x128xf32>
    %4 = vector.broadcast %0 : vector<1x128xf32> to vector<256x128xf32>
    %5 = arith.mulf %4, %2 : vector<256x128xf32>
    %6 = vector.broadcast %1 : vector<1x128xf32> to vector<256x128xf32>
    %7 = arith.mulf %6, %3 : vector<256x128xf32>
    %8 = arith.subf %5, %7 : vector<256x128xf32>
    %c0_6 = arith.constant 0 : index
    %c0_7 = arith.constant 0 : index
    %9 = vector.load %arg3[%c0_6, %c0_7] : memref<256x256xf32, #tpu.memory_space<vmem>>, vector<256x128xf32>
    tpu.vector_store %arg3[%c0_6, %c0_7], %8 {strides = array<i32>} : memref<256x256xf32, #tpu.memory_space<vmem>>, vector<256x128xf32>,
    %10 = vector.broadcast %0 : vector<1x128xf32> to vector<256x128xf32>
    %11 = arith.mulf %10, %3 : vector<256x128xf32>
    %12 = vector.broadcast %1 : vector<1x128xf32> to vector<256x128xf32>
    %13 = arith.mulf %12, %2 : vector<256x128xf32>
    %14 = arith.addf %11, %13 : vector<256x128xf32>
    %c0_8 = arith.constant 0 : index
    %c128_9 = arith.constant 128 : index
    %15 = vector.load %arg3[%c0_8, %c128_9] : memref<256x256xf32, #tpu.memory_space<vmem>>, vector<256x128xf32>
    tpu.vector_store %arg3[%c0_8, %c128_9], %14 {strides = array<i32>} : memref<256x256xf32, #tpu.memory_space<vmem>>, vector<256x128xf32>,
    return
  }
  func.func @transform_0(%arg0: i32) -> (i32, i32) {
    %c0_i32 = arith.constant 0 : i32
    %c0_i32_0 = arith.constant 0 : i32
    %c0_i32_1 = arith.constant 0 : i32
    return %c0_i32, %c0_i32_0 : i32, i32
  }
  func.func @transform_1(%arg0: i32) -> (i32, i32) {
    %c0_i32 = arith.constant 0 : i32
    %c0_i32_0 = arith.constant 0 : i32
    return %arg0, %c0_i32 : i32, i32
  }
  func.func @transform_2(%arg0: i32) -> (i32, i32) {
    %c0_i32 = arith.constant 0 : i32
    %c0_i32_0 = arith.constant 0 : i32
    return %arg0, %c0_i32 : i32, i32
  }
}

</mosaic_0001>

<bundles_post_ra>
// kernel: tpu_custom_call.1
= control target key start
LH: loop header
LB: loop body
LE: loop exit
PB: predicated region body
PF: predicated region fallthrough
CT: control target
= control target key end

     0   :  { %7 = vsyncpa [#allocation3], 0  ;;  %s1546_s0 = inlined_call_operand.hbm [shape: f32[1,256], index: 0, kind: input, shape index: {}]   ;;  %s1547_s1 = inlined_call_operand.hbm [shape: f32[512,256], index: 1, kind: input, shape index: {}]   ;;  %s1548_s2 = inlined_call_operand.hbm [shape: f32[512,256], index: 2, kind: output, shape index: {}]  }
   0x1   :  { %8 = vsyncpa [#allocation6], 0 }
   0x2   :  { %10 = vsyncpa [#allocation6 + $0x1], 0 }
   0x3   :  { %11 = vsyncpa [#allocation4], 0 }
   0x4   :  { %13 = vsyncpa [#allocation4 + $0x1], 0  ;;  %s843_s9 = smov 0   ;;  %s845_s10 = smov 0  }
   0x5   :  { %s847_s11 = smov 0   ;;  %s849_s12 = smov 0  }
   0x6 LB: > { %s864_s13 = sadd.s32 4294967295, %s819_s12   ;;  %s612_s14 = sadd.s32 4294967294, %s819_s12   ;;  %s819_s12 = sphi %s849_s12, %s1625_s12   ;;  %s815_s11 = sphi %s847_s11, %s1624_s11   ;;  %s811_s10 = sphi %s845_s10, %s1623_s10   ;;  %s807_s9 = sphi %s843_s9, %s1622_s9  }
   0x7   : > { %s868_s15 = sadd.s32 1, %s819_s12   ;;  %s47_s16 = sadd.s32 1, %s815_s11 }
   0x8   : > { %s44_s17 = ssub.s32 %s819_s12, %s868_s15  ;;  %p54_p0 = scmp.ne.s32.totalorder %s815_s11, %s811_s10 }
   0x9   : > { %p45_p1 = scmp.eq.s32.totalorder %s44_s17, 0  ;;  %p55_p2 = scmp.eq.s32.totalorder %s819_s12, 0 }
   0xa   : > { %p60_p3 = scmp.ne.s32.totalorder %s811_s10, %s807_s9  ;;  %p1549_p4 = scmp.eq.s32.totalorder %s864_s13, 0 }
   0xb   : > { %s880_s18 = scalar_select %p45_p1, %s815_s11, %s47_s16  }
   0xc   : > { %p882_p5 = por %p55_p2, %p54_p0  ;;  %p888_p6 = por %p1549_p4, %p60_p3 }
   0xd   : > { %p84_p7 = scmp.eq.s32.totalorder %s864_s13, 1  ;;  %p90_p8 = scmp.eq.s32.totalorder %s612_s14, 1 }
   0xe   : > { %s1572_s20 = scalar_select %p888_p6, 1, 0 }
   0xf   : > { %p613_p9 = scmp.ge.s32.totalorder %s819_s12, 1  ;;  %p97_p10 = scmp.lt.s32.totalorder %s819_s12, 3 }
  0x10   : > { %p895_p11 = por %p84_p7, %p54_p0  ;;  %p899_p12 = por %p90_p8, %p60_p3 }
  0x11   : > { %p903_p13 = pnand %p613_p9, %p97_p10  ;;  %s821_s24 = smov [#allocation2]  }
  0x12   : > { %s1573_s21 = scalar_select %p895_p11, 1, 0 }
  0x13   : > { %s1574_s22 = scalar_select %p899_p12, 1, 0 }
  0x14   : > { %s1575_s23 = scalar_select %p903_p13, 1, 0 }
  0x15   : > { %p644_p2 = pneg %p903_p13  ;;  %s110_s25 = sshll.u32 %s821_s24, 4  ;;  %s111_s25 = int_to_ptr.vmem [resolvable:$true] %s110_s25 }
  0x16   : > { %p657_p4 = scmp.lt.s32.totalorder %s819_s12, 2  ;;  %p1576_p0 = scmp.eq.s32.totalorder %s864_s13, 0 }
  0x17   : > { %s121_s27 = sand.u32 1, %s815_s11   ;;  %s708_s30 = scalar_lea.vmem %s111_s25, 32 }
  0x18   : > { %p913_p7 = pnand %p644_p2, %p1576_p0  ;;  %p920_p3 = pnand %p657_p4, %p882_p5 }
  0x19   : > { %s616_s29 = sshll.u32 %s121_s27, 9  ;;  %p709_p9 = scmp.ne.s32.totalorder %s111_s25, %s708_s30 }
  0x1a   : > { %p699_p8 = pneg %p913_p7  ;;  %p716_p12 = scmp.lt.s32.totalorder %s111_s25, %s111_s25 }
  0x1b   : > { %p717_p11 = scmp.lt.s32.totalorder %s708_s30, %s708_s30 }
  0x1c   : > { %p711_p10 = pnand %p709_p9, %p699_p8 }
  0x1d   : > { %p718_p2 = por %p717_p11, %p716_p12 }
  0x1e   : > { %p712_p1 = pneg %p711_p10 }
  0x20   : > { %p719_p0 = pnand %p718_p2, %p712_p1 }
  0x22   : > { %722 = shalt.err (!%p719_p0)
}
  0x23   : > { %647 = dma.hbm_to_vmem [thread:$0]  (!%p913_p7), %s1546_s0, 32, %s111_s25, [#allocation3]  }
  0x24   : > { %s633_s5 = sshll.u32 %s819_s12, 13  ;;  %s125_s6 = scalar_lea.vmem [#allocation5], %s616_s29 }
  0x25   : > { %s133_s7 = sshll.u32 %s125_s6, 4  ;;  %s935_s16 = scalar_lea.hbm %s1547_s1, %s633_s5  ;;  %s937_s7 = int_to_ptr.vmem [resolvable:$true] %s133_s7 }
  0x26   : > { %s939_s17 = scalar_lea.sflag [#allocation6], %s121_s27  ;;  %s723_s19 = scalar_lea.hbm %s935_s16, 8192 }
  0x27   : > { %p724_p4 = scmp.ne.s32.totalorder %s935_s16, %s723_s19  ;;  %p725_p5 = pneg %p920_p3 }
  0x28   : > { %s728_s26 = scalar_lea.hbm %s1547_s1, 16384  ;;  %p729_p1 = scmp.lt.s32.totalorder %s935_s16, %s1547_s1 }
  0x29   : > { %p726_p11 = pnand %p725_p5, %p724_p4  ;;  %p730_p7 = scmp.lt.s32.totalorder %s728_s26, %s723_s19 }
  0x2b   : > { %p727_p12 = pneg %p726_p11  ;;  %p731_p8 = por %p730_p7, %p729_p1 }
  0x2d   : > { %p732_p9 = pnand %p731_p8, %p727_p12 }
  0x2f   : > { %735 = shalt.err (!%p732_p9)
}
  0x30   : > { %s736_s27 = scalar_lea.vmem %s937_s7, 8192  ;;  %s822_s3 = smov [#allocation5]  }
  0x31   : > { %p737_p10 = scmp.ne.s32.totalorder %s937_s7, %s736_s27  ;;  %s741_s4 = sshll.u32 %s822_s3, 4  ;;  %s742_s4 = int_to_ptr.vmem [resolvable:$false] %s741_s4 }
  0x32   : > { %s743_s5 = scalar_lea.vmem %s742_s4, 16384  ;;  %p744_p4 = scmp.lt.s32.totalorder %s937_s7, %s742_s4 }
  0x33   : > { %p739_p2 = pnand %p737_p10, %p725_p5  ;;  %p745_p11 = scmp.lt.s32.totalorder %s743_s5, %s736_s27 }
  0x35   : > { %p740_p0 = pneg %p739_p2  ;;  %p746_p6 = por %p745_p11, %p744_p4 }
  0x37   : > { %p747_p13 = pnand %p746_p6, %p740_p0 }
  0x39   : > { %750 = shalt.err (!%p747_p13)
}
  0x3a   : > { %s823_s6 = smov 256   ;;  %s824_s8 = smov 16  }
  0x3b   : > { %651 = dma.hbm_to_vmem [thread:$0]  (!%p920_p3), %s935_s16, 8192, %s937_s7, %s939_s17, %s823_s6, %s823_s6, %s824_s8  }
  0x3c   : > { %p1579_p5 = scmp.ne.s32.totalorder %s1575_s23, 0 }
  0x3e   : > { %145 = sbr.rel (%p1579_p5) target bundleno = 149 (0x95), region = 28 }
  0x43   : > { %p1580_p12 = scmp.eq.s32.totalorder %s864_s13, 0 }
  0x45   : > { %794 = dma.done.wait (%p1580_p12), [#allocation3], 32   ;;  %p1581_p1 = pmov %p1580_p12 }
  0x46   : > { %s967_s14 = sand.u32 1, %s811_s10   ;;  %p1582_p6 = scmp.ne.s32.totalorder %s1572_s20, 0 }
  0x47   : > { %796 = vsyncadd (%p1581_p1), [#allocation3], 4294967264  ;;  %s622_s19 = sshll.u32 %s967_s14, 9  ;;  %s152_s24 = scalar_lea.sflag [#allocation6], %s967_s14 }
  0x48   : > { %s973_s28 = scalar_lea.vmem [#allocation5], %s622_s19 }
  0x49   : > { %798 = dma.done.wait (%p1582_p6), %s152_s24, 8192  }
  0x4a   : > { %800 = vsyncadd (%p1582_p6), %s152_s24, 4294959104  ;;  %v979_v0 = vld [vmem:[#allocation2] ss:$0 sm:$0xff]  ;;  %v981_v1 = vld [vmem:[#allocation2 + $0x1] ss:$0 sm:$0xff]  ;;  %s1057_s20 = scalar_lea.vmem [#allocation7], %s622_s19 }
  0x4b   : > { %v180_v2 = vld [vmem:[%s973_s28] sm:$0xff]  ;;  %v212_v3 = vld [vmem:[%s973_s28 + $0x8] sm:$0xff]  ;;  %v987_v5 = vld [vmem:[%s973_s28 + $0x10] sm:$0xff]  ;;  %s635_s23 = sshll.u32 %s864_s13, 13  ;;  %s527_s7 = sshll.u32 %s1057_s20, 4  ;;  %s1499_s7 = int_to_ptr.vmem [resolvable:$true] %s527_s7 }
  0x4c   : > { %v250_v4 = vmul.f32 %v979_v0, %v180_v2  ;;  %v213_v6 = vld [vmem:[%s973_s28 + $0x18] sm:$0xff]  ;;  %v991_v7 = vmul.f32 %v981_v1, %v180_v2  ;;  %v288_v8 = vmul.f32 %v981_v1, %v212_v3  ;;  %v251_v9 = vmul.f32 %v979_v0, %v987_v5  ;;  %v998_v11 = vld [vmem:[%s973_s28 + $0x20] sm:$0xff]  ;;  %v1001_v12 = vld [vmem:[%s973_s28 + $0x28] sm:$0xff]  ;;  %s1497_s17 = scalar_lea.hbm %s1548_s2, %s635_s23  ;;  %s513_s25 = scalar_lea.sflag [#allocation4], %s967_s14 }
  0x4d   : > { %v289_v10 = vmul.f32 %v981_v1, %v213_v6  ;;  %v1004_v13 = vld [vmem:[%s973_s28 + $0x30] sm:$0xff]  ;;  %v1007_v14 = vmul.f32 %v979_v0, %v212_v3  ;;  %v252_v15 = vmul.f32 %v979_v0, %v998_v11  ;;  %v290_v16 = vmul.f32 %v981_v1, %v1001_v12  ;;  %v1014_v17 = vld [vmem:[%s973_s28 + $0x38] sm:$0xff]  ;;  %v1019_v19 = vld [vmem:[%s973_s28 + $0x40] sm:$0xff]  ;;  %s751_s26 = scalar_lea.vmem %s1499_s7, 8192  ;;  %p1619_p3 = scmp.ne.s32.totalorder %s1573_s21, 0 }
  0x4e   : > { %v253_v18 = vmul.f32 %v979_v0, %v1004_v13  ;;  %v1022_v20 = vld [vmem:[%s973_s28 + $0x48] sm:$0xff]  ;;  %v1025_v21 = vmul.f32 %v979_v0, %v213_v6  ;;  %v320_v22 = vsub.f32 %v250_v4, %v288_v8  ;;  %v291_v24 = vmul.f32 %v981_v1, %v1014_v17  ;;  %v1032_v26 = vld [vmem:[%s973_s28 + $0x50] sm:$0xff]  ;;  %v1035_v27 = vld [vmem:[%s973_s28 + $0x58] sm:$0xff]  ;;  %p752_p13 = scmp.ne.s32.totalorder %s1499_s7, %s751_s26  ;;  %s825_s29 = smov [#allocation7]  }
  0x4f   : > { %v321_v23 = vsub.f32 %v251_v9, %v289_v10  ;;  %v254_v25 = vmul.f32 %v979_v0, %v1019_v19  ;;  %v1038_v28 = vld [vmem:[%s973_s28 + $0x60] sm:$0xff]  ;;  %v322_v29 = vsub.f32 %v252_v15, %v290_v16  ;;  %v292_v30 = vmul.f32 %v981_v1, %v1022_v20  ;;  %v1047_v33 = vld [vmem:[%s973_s28 + $0x68] sm:$0xff]  ;;  %v1050_v34 = vld [vmem:[%s973_s28 + $0x70] sm:$0xff]  ;;  %s755_s30 = sshll.u32 %s825_s29, 4  ;;  %s756_s30 = int_to_ptr.vmem [resolvable:$false] %s755_s30 }
  0x50   : > { %v255_v31 = vmul.f32 %v979_v0, %v1032_v26  ;;  %v293_v32 = vmul.f32 %v981_v1, %v1035_v27  ;;  %v1053_v35 = vld [vmem:[%s973_s28 + $0x78] sm:$0xff]  ;;  %352 = vst [vmem:[%s1057_s20] sm:$0xff] %v320_v22  ;;  %v323_v36 = vsub.f32 %v253_v18, %v291_v24  ;;  %v256_v37 = vmul.f32 %v979_v0, %v1038_v28  ;;  %v1068_v40 = vld [vmem:[%s973_s28 + $0x80] sm:$0xff]  ;;  %v1071_v41 = vld [vmem:[%s973_s28 + $0x88] sm:$0xff]  ;;  %p753_p7 = pnand %p752_p13, %p1619_p3  ;;  %s757_s27 = scalar_lea.vmem %s756_s30, 16384 }
  0x51   : > { %353 = vst [vmem:[%s1057_s20 + $0x10] sm:$0xff] %v321_v23  ;;  %v294_v38 = vmul.f32 %v981_v1, %v1047_v33  ;;  %v257_v39 = vmul.f32 %v979_v0, %v1050_v34  ;;  %v1074_v42 = vld [vmem:[%s973_s28 + $0x90] sm:$0xff]  ;;  %354 = vst [vmem:[%s1057_s20 + $0x20] sm:$0xff] %v322_v29  ;;  %v324_v43 = vsub.f32 %v254_v25, %v292_v30  ;;  %v1082_v47 = vld [vmem:[%s973_s28 + $0x98] sm:$0xff]  ;;  %p758_p9 = scmp.lt.s32.totalorder %s1499_s7, %s756_s30  ;;  %p759_p10 = scmp.lt.s32.totalorder %s757_s27, %s751_s26 }
  0x52   : > { %v325_v44 = vsub.f32 %v255_v31, %v293_v32  ;;  %v295_v45 = vmul.f32 %v981_v1, %v1053_v35  ;;  %v258_v46 = vmul.f32 %v979_v0, %v1068_v40  ;;  %v1085_v48 = vld [vmem:[%s973_s28 + $0xa0] sm:$0xff]  ;;  %v1088_v49 = vld [vmem:[%s973_s28 + $0xa8] sm:$0xff]  ;;  %355 = vst [vmem:[%s1057_s20 + $0x30] sm:$0xff] %v323_v36  ;;  %v296_v51 = vmul.f32 %v981_v1, %v1071_v41  ;;  %v1098_v54 = vld [vmem:[%s973_s28 + $0xb0] sm:$0xff]  ;;  %p754_p8 = pneg %p753_p7 }
  0x53   : > { %v326_v50 = vsub.f32 %v256_v37, %v294_v38  ;;  %v259_v52 = vmul.f32 %v979_v0, %v1074_v42  ;;  %v297_v53 = vmul.f32 %v981_v1, %v1082_v47  ;;  %v1101_v55 = vld [vmem:[%s973_s28 + $0xb8] sm:$0xff]  ;;  %v1104_v56 = vld [vmem:[%s973_s28 + $0xc0] sm:$0xff]  ;;  %356 = vst [vmem:[%s1057_s20 + $0x40] sm:$0xff] %v324_v43  ;;  %v260_v58 = vmul.f32 %v979_v0, %v1085_v48  ;;  %v1115_v61 = vld [vmem:[%s973_s28 + $0xc8] sm:$0xff]  ;;  %p760_p2 = por %p759_p10, %p758_p9 }
  0x54   : > { %357 = vst [vmem:[%s1057_s20 + $0x50] sm:$0xff] %v325_v44  ;;  %v327_v57 = vsub.f32 %v257_v39, %v295_v45  ;;  %v298_v59 = vmul.f32 %v981_v1, %v1088_v49  ;;  %v261_v60 = vmul.f32 %v979_v0, %v1098_v54  ;;  %v1118_v62 = vld [vmem:[%s973_s28 + $0xd0] sm:$0xff]  ;;  %v1121_v63 = vld [vmem:[%s973_s28 + $0xd8] sm:$0xff]  ;;  %v328_v2 = vsub.f32 %v258_v46, %v296_v51  ;;  %v1129_v8 = vld [vmem:[%s973_s28 + $0xe0] sm:$0xff] }
  0x55   : > { %358 = vst [vmem:[%s1057_s20 + $0x60] sm:$0xff] %v326_v50  ;;  %v329_v3 = vsub.f32 %v259_v52, %v297_v53  ;;  %v299_v4 = vmul.f32 %v981_v1, %v1101_v55  ;;  %v262_v6 = vmul.f32 %v979_v0, %v1104_v56  ;;  %v1132_v9 = vld [vmem:[%s973_s28 + $0xe8] sm:$0xff]  ;;  %v1135_v10 = vld [vmem:[%s973_s28 + $0xf0] sm:$0xff]  ;;  %v300_v16 = vmul.f32 %v981_v1, %v1115_v61  ;;  %v1145_v23 = vld [vmem:[%s973_s28 + $0xf8] sm:$0xff]  ;;  %p761_p0 = pnand %p760_p2, %p754_p8 }
  0x56   : > { %359 = vst [vmem:[%s1057_s20 + $0x70] sm:$0xff] %v327_v57  ;;  %v330_v15 = vsub.f32 %v260_v58, %v298_v59  ;;  %v263_v18 = vmul.f32 %v979_v0, %v1118_v62  ;;  %v301_v22 = vmul.f32 %v981_v1, %v1121_v63  ;;  %v1148_v24 = vld [vmem:[%s973_s28 + $0x100] sm:$0xff]  ;;  %v1151_v25 = vld [vmem:[%s973_s28 + $0x108] sm:$0xff]  ;;  %360 = vst [vmem:[%s1057_s20 + $0x80] sm:$0xff] %v328_v2 }
  0x57   : > { %361 = vst [vmem:[%s1057_s20 + $0x90] sm:$0xff] %v329_v3  ;;  %v331_v29 = vsub.f32 %v261_v60, %v299_v4  ;;  %v264_v30 = vmul.f32 %v979_v0, %v1129_v8  ;;  %v302_v31 = vmul.f32 %v981_v1, %v1132_v9  ;;  %v265_v32 = vmul.f32 %v979_v0, %v1135_v10  ;;  %v1162_v36 = vld [vmem:[%s973_s28 + $0x110] sm:$0xff]  ;;  %v1165_v37 = vld [vmem:[%s973_s28 + $0x118] sm:$0xff]  ;;  %v1168_v38 = vld [vmem:[%s973_s28 + $0x120] sm:$0xff] }
  0x58   : > { %362 = vst [vmem:[%s1057_s20 + $0xa0] sm:$0xff] %v330_v15  ;;  %v332_v39 = vsub.f32 %v262_v6, %v300_v16  ;;  %v333_v43 = vsub.f32 %v263_v18, %v301_v22  ;;  %v303_v44 = vmul.f32 %v981_v1, %v1145_v23  ;;  %v266_v45 = vmul.f32 %v979_v0, %v1148_v24  ;;  %v1176_v46 = vld [vmem:[%s973_s28 + $0x128] sm:$0xff]  ;;  %v1179_v50 = vld [vmem:[%s973_s28 + $0x130] sm:$0xff]  ;;  %v1182_v51 = vld [vmem:[%s973_s28 + $0x138] sm:$0xff] }
  0x59   : > { %1583 = vst [vmem:[#allocation11_spill] sm:$0xff] %v1179_v50  ;;  %1584 = vst [vmem:[#allocation12_spill] sm:$0xff] %v1182_v51  ;;  %v334_v52 = vsub.f32 %v264_v30, %v302_v31  ;;  %v304_v53 = vmul.f32 %v981_v1, %v1151_v25  ;;  %v267_v57 = vmul.f32 %v979_v0, %v1162_v36  ;;  %v1192_v59 = vld [vmem:[%s973_s28 + $0x140] sm:$0xff]  ;;  %v1195_v60 = vld [vmem:[%s973_s28 + $0x148] sm:$0xff] }
  0x5a   : > { %363 = vst [vmem:[%s1057_s20 + $0xb0] sm:$0xff] %v331_v29  ;;  %v305_v58 = vmul.f32 %v981_v1, %v1165_v37  ;;  %1585 = vst [vmem:[#allocation13_spill] sm:$0xff] %v1192_v59  ;;  %v1198_v2 = vld [vmem:[%s973_s28 + $0x150] sm:$0xff]  ;;  %v335_v3 = vsub.f32 %v265_v32, %v303_v44  ;;  %v268_v4 = vmul.f32 %v979_v0, %v1168_v38  ;;  %v1209_v16 = vld [vmem:[%s973_s28 + $0x158] sm:$0xff] }
  0x5b   : > { %1586 = vst [vmem:[#allocation14_spill] sm:$0xff] %v1195_v60  ;;  %1587 = vst [vmem:[#allocation15_spill] sm:$0xff] %v1198_v2  ;;  %v306_v6 = vmul.f32 %v981_v1, %v1176_v46  ;;  %v269_v15 = vmul.f32 %v979_v0, %v1179_v50  ;;  %v1212_v18 = vld [vmem:[%s973_s28 + $0x160] sm:$0xff]  ;;  %v1215_v22 = vld [vmem:[%s973_s28 + $0x168] sm:$0xff]  ;;  %v336_v29 = vsub.f32 %v266_v45, %v304_v53 }
  0x5c   : > { %364 = vst [vmem:[%s1057_s20 + $0xc0] sm:$0xff] %v332_v39  ;;  %365 = vst [vmem:[%s1057_s20 + $0xd0] sm:$0xff] %v333_v43  ;;  %v337_v30 = vsub.f32 %v267_v57, %v305_v58  ;;  %v307_v31 = vmul.f32 %v981_v1, %v1182_v51  ;;  %v270_v32 = vmul.f32 %v979_v0, %v1192_v59  ;;  %v1223_v39 = vld [vmem:[%s973_s28 + $0x170] sm:$0xff]  ;;  %v1226_v43 = vld [vmem:[%s973_s28 + $0x178] sm:$0xff] }
  0x5d   : > { %1588 = vst [vmem:[#allocation16_spill] sm:$0xff] %v1209_v16  ;;  %1589 = vst [vmem:[#allocation17_spill] sm:$0xff] %v1212_v18  ;;  %v1229_v44 = vld [vmem:[%s973_s28 + $0x180] sm:$0xff]  ;;  %v308_v45 = vmul.f32 %v981_v1, %v1195_v60  ;;  %v271_v53 = vmul.f32 %v979_v0, %v1198_v2  ;;  %v309_v57 = vmul.f32 %v981_v1, %v1209_v16  ;;  %v1239_v58 = vld [vmem:[%s973_s28 + $0x188] sm:$0xff] }
  0x5e   : > { %1590 = vst [vmem:[#allocation18_spill] sm:$0xff] %v1215_v22  ;;  %366 = vst [vmem:[%s1057_s20 + $0xe0] sm:$0xff] %v334_v52  ;;  %v338_v52 = vsub.f32 %v268_v4, %v306_v6  ;;  %v1242_v59 = vld [vmem:[%s973_s28 + $0x190] sm:$0xff]  ;;  %v1245_v50 = vld [vmem:[%s973_s28 + $0x198] sm:$0xff]  ;;  %v272_v4 = vmul.f32 %v979_v0, %v1212_v18  ;;  %v310_v6 = vmul.f32 %v981_v1, %v1215_v22 }
  0x5f   : > { %1591 = vst [vmem:[#allocation19_spill] sm:$0xff] %v1223_v39  ;;  %1592 = vst [vmem:[#allocation20_spill] sm:$0xff] %v1226_v43  ;;  %v273_v2 = vmul.f32 %v979_v0, %v1223_v39  ;;  %v1256_v16 = vld [vmem:[%s973_s28 + $0x1a0] sm:$0xff]  ;;  %v1259_v60 = vld [vmem:[%s973_s28 + $0x1a8] sm:$0xff]  ;;  %v274_v39 = vmul.f32 %v979_v0, %v1229_v44 }
  0x60   : > { %1593 = vst [vmem:[#allocation21_spill] sm:$0xff] %v1229_v44  ;;  %367 = vst [vmem:[%s1057_s20 + $0xf0] sm:$0xff] %v335_v3  ;;  %v339_v3 = vsub.f32 %v269_v15, %v307_v31  ;;  %v340_v15 = vsub.f32 %v270_v32, %v308_v45  ;;  %v311_v31 = vmul.f32 %v981_v1, %v1226_v43  ;;  %v1270_v18 = vld [vmem:[%s973_s28 + $0x1b8] sm:$0xff]  ;;  %v1273_v22 = vld [vmem:[%s973_s28 + $0x1c0] sm:$0xff] }
  0x61   : > { %1594 = vst [vmem:[#allocation22_spill] sm:$0xff] %v1239_v58  ;;  %1595 = vst [vmem:[#allocation23_spill] sm:$0xff] %v1242_v59  ;;  %v342_v51 = vsub.f32 %v272_v4, %v310_v6  ;;  %v312_v32 = vmul.f32 %v981_v1, %v1239_v58  ;;  %v313_v45 = vmul.f32 %v981_v1, %v1245_v50  ;;  %v1289_v44 = vld [vmem:[%s973_s28 + $0x1d8] sm:$0xff]  ;;  %v1303_v58 = vld [vmem:[%s973_s28 + $0x1e8] sm:$0xff] }
  0x62   : > { %1596 = vst [vmem:[#allocation24_spill] sm:$0xff] %v1245_v50  ;;  %368 = vst [vmem:[%s1057_s20 + $0x100] sm:$0xff] %v336_v29  ;;  %v1262_v29 = vld [vmem:[%s973_s28 + $0x1b0] sm:$0xff]  ;;  %v276_v4 = vmul.f32 %v979_v0, %v1256_v16  ;;  %v314_v6 = vmul.f32 %v981_v1, %v1259_v60  ;;  %v1300_v50 = vld [vmem:[%s973_s28 + $0x1e0] sm:$0xff] }
  0x63   : > { %369 = vst [vmem:[%s1057_s20 + $0x110] sm:$0xff] %v337_v30  ;;  %1597 = vst [vmem:[#allocation25_spill] sm:$0xff] %v1256_v16  ;;  %v341_v30 = vsub.f32 %v271_v53, %v309_v57  ;;  %v1283_v53 = vld [vmem:[%s973_s28 + $0x1c8] sm:$0xff]  ;;  %v1286_v57 = vld [vmem:[%s973_s28 + $0x1d0] sm:$0xff] }
  0x64   : > { %1598 = vst [vmem:[#allocation26_spill] sm:$0xff] %v1259_v60  ;;  %1599 = vst [vmem:[#allocation27_spill] sm:$0xff] %v1262_v29  ;;  %v1306_v43 = vld [vmem:[%s973_s28 + $0x1f0] sm:$0xff]  ;;  %v1314_v16 = vld [vmem:[%s973_s28 + $0x1f8] sm:$0xff]  ;;  %v316_v60 = vmul.f32 %v981_v1, %v1283_v53 }
  0x65   : > { %370 = vst [vmem:[%s1057_s20 + $0x120] sm:$0xff] %v338_v52  ;;  %371 = vst [vmem:[%s1057_s20 + $0x130] sm:$0xff] %v339_v3  ;;  %v275_v52 = vmul.f32 %v979_v0, %v1242_v59  ;;  %v343_v3 = vsub.f32 %v273_v2, %v311_v31  ;;  %v277_v59 = vmul.f32 %v979_v0, %v1262_v29 }
  0x66   : > { %372 = vst [vmem:[%s1057_s20 + $0x140] sm:$0xff] %v340_v15  ;;  %373 = vst [vmem:[%s1057_s20 + $0x150] sm:$0xff] %v341_v30  ;;  %v344_v15 = vsub.f32 %v274_v39, %v312_v32  ;;  %v315_v30 = vmul.f32 %v981_v1, %v1270_v18  ;;  %v278_v31 = vmul.f32 %v979_v0, %v1273_v22 }
  0x67   : > { %1600 = vst [vmem:[#allocation28_spill] sm:$0xff] %v1300_v50  ;;  %374 = vst [vmem:[%s1057_s20 + $0x160] sm:$0xff] %v342_v51  ;;  %v345_v2 = vsub.f32 %v275_v52, %v313_v45  ;;  %v346_v29 = vsub.f32 %v276_v4, %v314_v6  ;;  %v279_v51 = vmul.f32 %v979_v0, %v1286_v57 }
  0x68   : > { %375 = vst [vmem:[%s1057_s20 + $0x170] sm:$0xff] %v343_v3  ;;  %v317_v39 = vmul.f32 %v981_v1, %v1289_v44  ;;  %376 = vst [vmem:[%s1057_s20 + $0x180] sm:$0xff] %v344_v15  ;;  %v347_v32 = vsub.f32 %v277_v59, %v315_v30  ;;  %v280_v52 = vmul.f32 %v979_v0, %v1300_v50 }
  0x69   : > { %377 = vst [vmem:[%s1057_s20 + $0x190] sm:$0xff] %v345_v2  ;;  %v318_v45 = vmul.f32 %v981_v1, %v1303_v58  ;;  %v281_v3 = vmul.f32 %v979_v0, %v1306_v43  ;;  %378 = vst [vmem:[%s1057_s20 + $0x1a0] sm:$0xff] %v346_v29  ;;  %v348_v4 = vsub.f32 %v278_v31, %v316_v60 }
  0x6a   : > { %v349_v6 = vsub.f32 %v279_v51, %v317_v39  ;;  %v319_v15 = vmul.f32 %v981_v1, %v1314_v16  ;;  %v448_v59 = vadd.f32 %v991_v7, %v1007_v14  ;;  %379 = vst [vmem:[%s1057_s20 + $0x1b0] sm:$0xff] %v347_v32  ;;  %v417_v30 = vmul.f32 %v981_v1, %v987_v5 }
  0x6b   : > { %v350_v2 = vsub.f32 %v280_v52, %v318_v45  ;;  %v386_v50 = vmul.f32 %v979_v0, %v1001_v12  ;;  %v418_v60 = vmul.f32 %v981_v1, %v998_v11  ;;  %380 = vst [vmem:[%s1057_s20 + $0x1c0] sm:$0xff] %v348_v4  ;;  %v387_v7 = vmul.f32 %v979_v0, %v1014_v17 }
  0x6c   : > { %381 = vst [vmem:[%s1057_s20 + $0x1d0] sm:$0xff] %v349_v6  ;;  %v351_v29 = vsub.f32 %v281_v3, %v319_v15  ;;  %480 = vst [vmem:[%s1057_s20 + $0x8] sm:$0xff] %v448_v59  ;;  %v419_v14 = vmul.f32 %v981_v1, %v1004_v13  ;;  %v388_v5 = vmul.f32 %v979_v0, %v1022_v20 }
  0x6d   : > { %382 = vst [vmem:[%s1057_s20 + $0x1e0] sm:$0xff] %v350_v2  ;;  %v449_v12 = vadd.f32 %v417_v30, %v1025_v21  ;;  %v450_v11 = vadd.f32 %v418_v60, %v386_v50  ;;  %v420_v31 = vmul.f32 %v981_v1, %v1019_v19  ;;  %v389_v51 = vmul.f32 %v979_v0, %v1035_v27  ;;  %v1601_v60 = vld [vmem:[#allocation12_spill] sm:$0xff] }
  0x6e   : > { %383 = vst [vmem:[%s1057_s20 + $0x1f0] sm:$0xff] %v351_v29  ;;  %v451_v17 = vadd.f32 %v419_v14, %v387_v7  ;;  %v421_v13 = vmul.f32 %v981_v1, %v1032_v26  ;;  %v390_v20 = vmul.f32 %v979_v0, %v1047_v33  ;;  %v422_v39 = vmul.f32 %v981_v1, %v1038_v28  ;;  %v1602_v29 = vld [vmem:[#allocation11_spill] sm:$0xff]  ;;  %v1603_v14 = vld [vmem:[#allocation14_spill] sm:$0xff] }
  0x6f   : > { %481 = vst [vmem:[%s1057_s20 + $0x18] sm:$0xff] %v449_v12  ;;  %482 = vst [vmem:[%s1057_s20 + $0x28] sm:$0xff] %v450_v11  ;;  %v452_v19 = vadd.f32 %v420_v31, %v388_v5  ;;  %v391_v21 = vmul.f32 %v979_v0, %v1053_v35  ;;  %v423_v27 = vmul.f32 %v981_v1, %v1050_v34  ;;  %v1604_v12 = vld [vmem:[#allocation13_spill] sm:$0xff]  ;;  %v1605_v11 = vld [vmem:[#allocation16_spill] sm:$0xff] }
  0x70   : > { %v392_v26 = vmul.f32 %v979_v0, %v1071_v41  ;;  %483 = vst [vmem:[%s1057_s20 + $0x38] sm:$0xff] %v451_v17  ;;  %v453_v33 = vadd.f32 %v421_v13, %v389_v51  ;;  %v454_v50 = vadd.f32 %v422_v39, %v390_v20  ;;  %v424_v28 = vmul.f32 %v981_v1, %v1068_v40  ;;  %v1606_v17 = vld [vmem:[#allocation15_spill] sm:$0xff]  ;;  %v1607_v20 = vld [vmem:[#allocation18_spill] sm:$0xff] }
  0x71   : > { %v393_v32 = vmul.f32 %v979_v0, %v1082_v47  ;;  %484 = vst [vmem:[%s1057_s20 + $0x48] sm:$0xff] %v452_v19  ;;  %v455_v52 = vadd.f32 %v423_v27, %v391_v21  ;;  %v425_v35 = vmul.f32 %v981_v1, %v1074_v42  ;;  %v394_v34 = vmul.f32 %v979_v0, %v1088_v49  ;;  %v1608_v19 = vld [vmem:[#allocation17_spill] sm:$0xff] }
  0x72   : > { %v426_v41 = vmul.f32 %v981_v1, %v1085_v48  ;;  %485 = vst [vmem:[%s1057_s20 + $0x58] sm:$0xff] %v453_v33  ;;  %486 = vst [vmem:[%s1057_s20 + $0x68] sm:$0xff] %v454_v50  ;;  %v456_v40 = vadd.f32 %v424_v28, %v392_v26  ;;  %v395_v47 = vmul.f32 %v979_v0, %v1101_v55  ;;  %v1609_v26 = vld [vmem:[#allocation20_spill] sm:$0xff]  ;;  %v1610_v50 = vld [vmem:[#allocation19_spill] sm:$0xff] }
  0x73   : > { %v427_v45 = vmul.f32 %v981_v1, %v1098_v54  ;;  %v396_v42 = vmul.f32 %v979_v0, %v1115_v61  ;;  %487 = vst [vmem:[%s1057_s20 + $0x78] sm:$0xff] %v455_v52  ;;  %v457_v49 = vadd.f32 %v425_v35, %v393_v32  ;;  %v428_v48 = vmul.f32 %v981_v1, %v1104_v56  ;;  %v1611_v32 = vld [vmem:[#allocation22_spill] sm:$0xff] }
  0x74   : > { %v458_v3 = vadd.f32 %v426_v41, %v394_v34  ;;  %v397_v4 = vmul.f32 %v979_v0, %v1121_v63  ;;  %488 = vst [vmem:[%s1057_s20 + $0x88] sm:$0xff] %v456_v40  ;;  %v429_v55 = vmul.f32 %v981_v1, %v1118_v62  ;;  %v398_v54 = vmul.f32 %v979_v0, %v1132_v9  ;;  %v1612_v41 = vld [vmem:[#allocation21_spill] sm:$0xff] }
  0x75   : > { %v459_v6 = vadd.f32 %v427_v45, %v395_v47  ;;  %v430_v61 = vmul.f32 %v981_v1, %v1129_v8  ;;  %489 = vst [vmem:[%s1057_s20 + $0x98] sm:$0xff] %v457_v49  ;;  %v460_v56 = vadd.f32 %v428_v48, %v396_v42  ;;  %v399_v63 = vmul.f32 %v979_v0, %v1145_v23  ;;  %v1613_v47 = vld [vmem:[#allocation24_spill] sm:$0xff]  ;;  %v1614_v49 = vld [vmem:[#allocation23_spill] sm:$0xff]  ;;  %v1615_v48 = vld [vmem:[#allocation26_spill] sm:$0xff] }
  0x76   : > { %490 = vst [vmem:[%s1057_s20 + $0xa8] sm:$0xff] %v458_v3  ;;  %v431_v15 = vmul.f32 %v981_v1, %v1135_v10  ;;  %v400_v62 = vmul.f32 %v979_v0, %v1151_v25  ;;  %v461_v9 = vadd.f32 %v429_v55, %v397_v4  ;;  %v432_v8 = vmul.f32 %v981_v1, %v1148_v24 }
  0x77   : > { %491 = vst [vmem:[%s1057_s20 + $0xb8] sm:$0xff] %v459_v6  ;;  %v462_v59 = vadd.f32 %v430_v61, %v398_v54  ;;  %v401_v2 = vmul.f32 %v979_v0, %v1165_v37  ;;  %492 = vst [vmem:[%s1057_s20 + $0xc8] sm:$0xff] %v460_v56  ;;  %v433_v23 = vmul.f32 %v981_v1, %v1162_v36  ;;  %v1616_v6 = vld [vmem:[#allocation25_spill] sm:$0xff]  ;;  %v1617_v56 = vld [vmem:[#allocation27_spill] sm:$0xff] }
  0x78   : > { %v463_v30 = vadd.f32 %v431_v15, %v399_v63  ;;  %v402_v10 = vmul.f32 %v979_v0, %v1176_v46  ;;  %v434_v25 = vmul.f32 %v981_v1, %v1168_v38  ;;  %493 = vst [vmem:[%s1057_s20 + $0xd8] sm:$0xff] %v461_v9  ;;  %v464_v24 = vadd.f32 %v432_v8, %v400_v62 }
  0x79   : > { %494 = vst [vmem:[%s1057_s20 + $0xe8] sm:$0xff] %v462_v59  ;;  %v403_v37 = vmul.f32 %v979_v0, %v1601_v60  ;;  %v435_v7 = vmul.f32 %v981_v1, %v1602_v29  ;;  %v404_v36 = vmul.f32 %v979_v0, %v1603_v14  ;;  %v465_v46 = vadd.f32 %v433_v23, %v401_v2 }
  0x7a   : > { %495 = vst [vmem:[%s1057_s20 + $0xf8] sm:$0xff] %v463_v30  ;;  %v466_v5 = vadd.f32 %v434_v25, %v402_v10  ;;  %v436_v38 = vmul.f32 %v981_v1, %v1604_v12  ;;  %v405_v31 = vmul.f32 %v979_v0, %v1605_v11  ;;  %496 = vst [vmem:[%s1057_s20 + $0x108] sm:$0xff] %v464_v24  ;;  %v1618_v30 = vld [vmem:[#allocation28_spill] sm:$0xff] }
  0x7b   : > { %v467_v51 = vadd.f32 %v435_v7, %v403_v37  ;;  %v437_v13 = vmul.f32 %v981_v1, %v1606_v17  ;;  %v406_v39 = vmul.f32 %v979_v0, %v1607_v20  ;;  %v438_v21 = vmul.f32 %v981_v1, %v1608_v19  ;;  %497 = vst [vmem:[%s1057_s20 + $0x118] sm:$0xff] %v465_v46 }
  0x7c   : > { %498 = vst [vmem:[%s1057_s20 + $0x128] sm:$0xff] %v466_v5  ;;  %v468_v27 = vadd.f32 %v436_v38, %v404_v36  ;;  %v407_v33 = vmul.f32 %v979_v0, %v1609_v26  ;;  %v439_v28 = vmul.f32 %v981_v1, %v1610_v50  ;;  %v408_v52 = vmul.f32 %v979_v0, %v1611_v32 }
  0x7d   : > { %499 = vst [vmem:[%s1057_s20 + $0x138] sm:$0xff] %v467_v51  ;;  %v469_v35 = vadd.f32 %v437_v13, %v405_v31  ;;  %v470_v34 = vadd.f32 %v438_v21, %v406_v39  ;;  %v440_v40 = vmul.f32 %v981_v1, %v1612_v41  ;;  %v409_v45 = vmul.f32 %v979_v0, %v1613_v47 }
  0x7e   : > { %500 = vst [vmem:[%s1057_s20 + $0x148] sm:$0xff] %v468_v27  ;;  %v471_v42 = vadd.f32 %v439_v28, %v407_v33  ;;  %v441_v3 = vmul.f32 %v981_v1, %v1614_v49  ;;  %v410_v4 = vmul.f32 %v979_v0, %v1615_v48  ;;  %v442_v55 = vmul.f32 %v981_v1, %v1616_v6 }
  0x7f   : > { %501 = vst [vmem:[%s1057_s20 + $0x158] sm:$0xff] %v469_v35  ;;  %502 = vst [vmem:[%s1057_s20 + $0x168] sm:$0xff] %v470_v34  ;;  %v472_v54 = vadd.f32 %v440_v40, %v408_v52  ;;  %v411_v61 = vmul.f32 %v979_v0, %v1270_v18  ;;  %v443_v63 = vmul.f32 %v981_v1, %v1617_v56 }
  0x80   : > { %v412_v15 = vmul.f32 %v979_v0, %v1283_v53  ;;  %503 = vst [vmem:[%s1057_s20 + $0x178] sm:$0xff] %v471_v42  ;;  %v473_v62 = vadd.f32 %v441_v3, %v409_v45  ;;  %v474_v9 = vadd.f32 %v442_v55, %v410_v4  ;;  %v444_v59 = vmul.f32 %v981_v1, %v1273_v22 }
  0x81   : > { %v413_v8 = vmul.f32 %v979_v0, %v1289_v44  ;;  %504 = vst [vmem:[%s1057_s20 + $0x188] sm:$0xff] %v472_v54  ;;  %v475_v18 = vadd.f32 %v443_v63, %v411_v61  ;;  %v445_v2 = vmul.f32 %v981_v1, %v1286_v57  ;;  %v414_v53 = vmul.f32 %v979_v0, %v1303_v58 }
  0x82   : > { %v446_v22 = vmul.f32 %v981_v1, %v1618_v30  ;;  %505 = vst [vmem:[%s1057_s20 + $0x198] sm:$0xff] %v473_v62  ;;  %506 = vst [vmem:[%s1057_s20 + $0x1a8] sm:$0xff] %v474_v9  ;;  %v476_v44 = vadd.f32 %v444_v59, %v412_v15  ;;  %v415_v23 = vmul.f32 %v979_v0, %v1314_v16 }
  0x83   : > { %v447_v10 = vmul.f32 %v981_v1, %v1306_v43  ;;  %507 = vst [vmem:[%s1057_s20 + $0x1b8] sm:$0xff] %v475_v18  ;;  %v477_v57 = vadd.f32 %v445_v2, %v413_v8 }
  0x84   : > { %v478_v25 = vadd.f32 %v446_v22, %v414_v53  ;;  %508 = vst [vmem:[%s1057_s20 + $0x1c8] sm:$0xff] %v476_v44 }
  0x85   : > { %v479_v58 = vadd.f32 %v447_v10, %v415_v23  ;;  %509 = vst [vmem:[%s1057_s20 + $0x1d8] sm:$0xff] %v477_v57 }
  0x86   : > { %510 = vst [vmem:[%s1057_s20 + $0x1e8] sm:$0xff] %v478_v25 }
  0x87   : > { %511 = vst [vmem:[%s1057_s20 + $0x1f8] sm:$0xff] %v479_v58 }
  0x88   : > { %764 = shalt.err (!%p761_p0)
}
  0x89   : > { %s765_s3 = scalar_lea.hbm %s1497_s17, 8192  ;;  %s769_s6 = scalar_lea.hbm %s1548_s2, 16384 }
  0x8a   : > { %p766_p4 = scmp.ne.s32.totalorder %s1497_s17, %s765_s3  ;;  %p770_p12 = scmp.lt.s32.totalorder %s1497_s17, %s1548_s2 }
  0x8b   : > { %p771_p1 = scmp.lt.s32.totalorder %s769_s6, %s765_s3 }
  0x8c   : > { %p767_p11 = pnand %p766_p4, %p1619_p3 }
  0x8d   : > { %p772_p6 = por %p771_p1, %p770_p12 }
  0x8e   : > { %p768_p5 = pneg %p767_p11 }
  0x90   : > { %p773_p13 = pnand %p772_p6, %p768_p5 }
  0x92   : > { %776 = shalt.err (!%p773_p13)
}
  0x93   : > { %s826_s24 = smov 256   ;;  %s827_s28 = smov 16  }
  0x94   : > { %642 = dma.vmem_to_hbm [thread:$0]  (%p1619_p3), %s1499_s7, 8192, %s1497_s17, %s513_s25, %s826_s24, %s826_s24, %s827_s28  }
  0x95 PF: > { %s542_s20 = sand.u32 1, %s807_s9   ;;  %p1620_p7 = scmp.ne.s32.totalorder %s1574_s22, 0 }
  0x96   : > { %p1621_p8 = scmp.ge.s32.totalorder %s819_s12, 2  ;;  %s543_s23 = scalar_lea.sflag [#allocation4], %s542_s20 }
  0x98   : > { %p653_p9 = pnand %p1621_p8, %p1620_p7 }
  0x9a   : > { %p654_p10 = pneg %p653_p9 }
  0x9c   : > { %802 = dma.done.wait (%p654_p10), %s543_s23, 8192  }
  0x9d   : > { %804 = vsyncadd (%p654_p10), %s543_s23, 4294959104  ;;  %p16_p2 = scmp.ge.s32.totalorder %s868_s15, 4   ;;  %s1622_s9 = smov %s811_s10 }
  0x9e   : > { %s1623_s10 = smov %s815_s11  ;;  %s1624_s11 = smov %s880_s18 }
  0x9f   : > { %s1625_s12 = smov %s868_s15  ;;  %18 = sbr.rel (!%p16_p2) target bundleno = 6 (0x6), region = 78 }
  0xa4   :  { %548 = vsyncpa [#allocation3], 1 }
  0xa5   :  { %550 = vsyncpa [#allocation3 + $0x1], 1 }
  0xa6   :  { %551 = vsyncpa [#allocation6], 1 }
  0xa7   :  { %553 = vsyncpa [#allocation6 + $0x1], 1 }
  0xa8   :  { %554 = vsyncpa [#allocation4], 1 }
  0xa9   :  { %556 = vsyncpa [#allocation4 + $0x1], 1 }

</bundles_post_ra>
